<compile_context>
chip_gen: v7x
topology: tpu7x:2x2x1
jax: 0.10.0
libtpu: 0.0.40
codegen_flags: <defaults>
</compile_context>

<pallas_src>
import jax
import jax.numpy as jnp
from jax.experimental import pallas as pl
from jax.experimental.pallas import tpu as pltpu


def attention_pooling_kernel(x_ref, w1_ref, b1_ref, w2_ref, o_ref):
    TB, T, D = x_ref.shape
    x = x_ref[...]                                   # (TB, T, D), native dtype (bf16 ok)
    xf = x.reshape(TB * T, D)                        # collapse batch+seq -> big MXU M dim

    # hidden = tanh(x @ W1 + b1) : (TB*T, Hp)   (MXU matmul, f32 accumulation)
    h = jnp.tanh(
        jnp.dot(xf, w1_ref[...], preferred_element_type=jnp.float32) + b1_ref[...]
    )

    # scores: VPU multiply + cross-lane reduce instead of an N=1 MXU matmul : (TB*T, 1)
    s = jnp.sum(h * w2_ref[...], axis=-1, keepdims=True)
    s = s.reshape(TB, T, 1)

    # softmax over the sequence axis (dim=1 in the PyTorch module), numerically stable.
    s = s - jnp.max(s, axis=1, keepdims=True)
    e = jnp.exp(s)
    # approx reciprocal runs on the otherwise-idle EUP slot; error ~1e-3 relative,
    # well below bf16 output precision.
    w = e * pl.reciprocal(jnp.sum(e, axis=1, keepdims=True), approx=True)  # (TB, T, 1)

    # weighted sum over the sequence axis : (TB, D)  (product promotes to f32)
    o_ref[...] = jnp.sum(w * x, axis=1).astype(o_ref.dtype)


def _round_up(n, m):
    return ((n + m - 1) // m) * m


def _pick_tb(B, T, D, x_itemsize, hp, vmem_budget_bytes):
    """Largest batch-block that divides B, fits the VMEM budget and (when possible)
    leaves >=2 grid steps so both v7x TensorCores get work. Prefers multiples of 8
    so the (TB, D) output block is sublane-aligned."""
    per_row = (2 * T * D * x_itemsize       # double-buffered x tile
               + 4 * T * hp                 # f32 hidden activations
               + 2 * D * max(x_itemsize, 4))  # double-buffered output rows
    cap = max(1, vmem_budget_bytes // max(per_row, 1))

    divisors = [d for d in range(1, B + 1) if B % d == 0 and d <= cap]
    if not divisors:
        return 1
    two_step = [d for d in divisors if B // d >= 2]
    pool = two_step if two_step else divisors
    aligned = [d for d in pool if d % 8 == 0]
    pool = aligned if aligned else pool
    return max(pool)


def attention_pooling(x, w1, b1, w2, b2=None, *, vmem_budget_bytes=20 << 20):
    """x: (B, T, D); w1: (D, H); b1: (H,); w2: (H, 1); b2: (1,) or None. Returns (B, D).

    b2 is accepted for API fidelity but ignored: softmax along dim=1 is invariant to a
    scalar shift of the scores, so the second Linear's bias cannot affect the output.
    """
    del b2
    B, T, D = x.shape
    H = w1.shape[1]

    # Pad the hidden dim to a multiple of 128 lanes (zero padding is exact: padded
    # w2 rows are zero, so padded hidden channels contribute nothing to the score).
    Hp = max(128, _round_up(H, 128))
    if Hp != H:
        w1 = jnp.pad(w1, ((0, 0), (0, Hp - H)))
        b1 = jnp.pad(b1, (0, Hp - H))
        w2 = jnp.pad(w2, ((0, Hp - H), (0, 0)))

    b1_row = b1.reshape(1, Hp)
    w2_row = w2.reshape(1, Hp)      # used as a broadcast row for the VPU reduce

    TB = _pick_tb(B, T, D, x.dtype.itemsize, Hp, vmem_budget_bytes)

    return pl.pallas_call(
        attention_pooling_kernel,
        out_shape=jax.ShapeDtypeStruct((B, D), x.dtype),
        grid_spec=pltpu.PrefetchScalarGridSpec(
            num_scalar_prefetch=0,
            grid=(B // TB,),
            in_specs=[
                pl.BlockSpec((TB, T, D), lambda b: (b, 0, 0)),  # x batch block
                pl.BlockSpec((D, Hp), lambda b: (0, 0)),        # W1
                pl.BlockSpec((1, Hp), lambda b: (0, 0)),        # b1
                pl.BlockSpec((1, Hp), lambda b: (0, 0)),        # W2 (as a row)
            ],
            out_specs=pl.BlockSpec((TB, D), lambda b: (b, 0)),
        ),
        compiler_params=pltpu.CompilerParams(
            dimension_semantics=("parallel",),      # batch axis -> both v7x TCs
            vmem_limit_bytes=32 * 1024 * 1024,      # above v5e's 16 MiB default, safe on v7x
        ),
    )(x, w1, b1_row, w2_row)


def attention_pooling_ref(x, w1, b1, w2, b2):
    """Pure-JAX reference mirroring the PyTorch forward (keeps b2)."""
    s = jnp.tanh(x @ w1 + b1) @ w2 + b2            # (B, T, 1)
    w = jax.nn.softmax(s, axis=1)                  # softmax over dim=1
    return jnp.sum(w * x, axis=1)                  # (B, D)


if __name__ == "__main__":
    key = jax.random.PRNGKey(0)
    B, T, D = 16, 8, 32
    H = D // 2

    k_x, k_w1, k_b1, k_w2, k_b2 = jax.random.split(key, 5)

    x = jax.random.normal(k_x, (B, T, D), dtype=jnp.float32)
    # Deterministic parameter init (uniform, like PyTorch Linear default scale).
    bound1 = 1.0 / (D ** 0.5)
    bound2 = 1.0 / (H ** 0.5)
    w1 = jax.random.uniform(k_w1, (D, H), jnp.float32, -bound1, bound1)
    b1 = jax.random.uniform(k_b1, (H,), jnp.float32, -bound1, bound1)
    w2 = jax.random.uniform(k_w2, (H, 1), jnp.float32, -bound2, bound2)
    b2 = jax.random.uniform(k_b2, (1,), jnp.float32, -bound2, bound2)

    out = attention_pooling(x, w1, b1, w2, b2)
    out = jax.block_until_ready(out)

    ref = attention_pooling_ref(x, w1, b1, w2, b2)
    assert out.shape == (B, D)
    # Tolerance accounts for the approx (EUP) reciprocal in the softmax denominator.
    assert jnp.allclose(out, ref, atol=5e-3, rtol=5e-3), "mismatch vs reference"

    print("KERNEL_OK")
</pallas_src>

<mosaic_0001>
module attributes {stable_mosaic.version = 11 : i64} {
  func.func @attention_pooling_kernel(%arg0: i32, %arg1: memref<8x8x32xf32, #tpu.memory_space<vmem>>, %arg2: memref<32x128xf32, #tpu.memory_space<vmem>>, %arg3: memref<1x128xf32, #tpu.memory_space<vmem>>, %arg4: memref<1x128xf32, #tpu.memory_space<vmem>>, %arg5: memref<8x32xf32, #tpu.memory_space<vmem>>) attributes {dimension_semantics = [#tpu.dimension_semantics<parallel>], iteration_bounds = array<i64: 2>, scalar_prefetch = 0 : i64, scratch_operands = 0 : i64, tpu.core_type = #tpu.core_type<tc>, window_params = [{transform_indices = @transform_0, window_bounds = array<i64: 8, 8, 32>}, {pipeline_mode = #tpu.pipeline_mode<synchronous>, transform_indices = @transform_1, window_bounds = array<i64: 32, 128>}, {pipeline_mode = #tpu.pipeline_mode<synchronous>, transform_indices = @transform_2, window_bounds = array<i64: 1, 128>}, {pipeline_mode = #tpu.pipeline_mode<synchronous>, transform_indices = @transform_3, window_bounds = array<i64: 1, 128>}, {transform_indices = @transform_4, window_bounds = array<i64: 8, 32>}]} {
    %c0 = arith.constant 0 : index
    %c0_0 = arith.constant 0 : index
    %c0_1 = arith.constant 0 : index
    %0 = vector.load %arg1[%c0, %c0_0, %c0_1] : memref<8x8x32xf32, #tpu.memory_space<vmem>>, vector<8x8x32xf32>
    %1 = vector.shape_cast %0 : vector<8x8x32xf32> to vector<64x32xf32>
    %c0_2 = arith.constant 0 : index
    %c0_3 = arith.constant 0 : index
    %2 = vector.load %arg2[%c0_2, %c0_3] : memref<32x128xf32, #tpu.memory_space<vmem>>, vector<32x128xf32>
    %cst = arith.constant dense<0.000000e+00> : vector<64x128xf32>
    %3 = tpu.matmul %1, %2, %cst {dimension_numbers = #tpu.dot_dimension_numbers<[1], [0], [0], [1], [0, 0, 1, 1], [], []>} : vector<64x32xf32>, vector<32x128xf32>, vector<64x128xf32> -> vector<64x128xf32>
    %c0_4 = arith.constant 0 : index
    %c0_5 = arith.constant 0 : index
    %4 = vector.load %arg3[%c0_4, %c0_5] : memref<1x128xf32, #tpu.memory_space<vmem>>, vector<1x128xf32>
    %5 = vector.broadcast %4 : vector<1x128xf32> to vector<64x128xf32>
    %6 = arith.addf %3, %5 : vector<64x128xf32>
    %7 = math.tanh %6 : vector<64x128xf32>
    %c0_6 = arith.constant 0 : index
    %c0_7 = arith.constant 0 : index
    %8 = vector.load %arg4[%c0_6, %c0_7] : memref<1x128xf32, #tpu.memory_space<vmem>>, vector<1x128xf32>
    %9 = vector.broadcast %8 : vector<1x128xf32> to vector<64x128xf32>
    %10 = arith.mulf %7, %9 : vector<64x128xf32>
    %cst_8 = arith.constant dense<0.000000e+00> : vector<64xf32>
    %11 = vector.multi_reduction <add>, %10, %cst_8 [1] : vector<64x128xf32> to vector<64xf32>
    %12 = vector.shape_cast %11 : vector<64xf32> to vector<64x1xf32>
    %13 = vector.shape_cast %12 : vector<64x1xf32> to vector<8x8x1xf32>
    %cst_9 = arith.constant dense<0xFF800000> : vector<8x1xf32>
    %14 = vector.multi_reduction <maximumf>, %13, %cst_9 [1] : vector<8x8x1xf32> to vector<8x1xf32>
    %15 = vector.shape_cast %14 : vector<8x1xf32> to vector<8x1x1xf32>
    %16 = vector.broadcast %15 : vector<8x1x1xf32> to vector<8x8x1xf32>
    %17 = arith.subf %13, %16 : vector<8x8x1xf32>
    %18 = math.exp %17 : vector<8x8x1xf32>
    %cst_10 = arith.constant dense<0.000000e+00> : vector<8x1xf32>
    %19 = vector.multi_reduction <add>, %18, %cst_10 [1] : vector<8x8x1xf32> to vector<8x1xf32>
    %20 = vector.shape_cast %19 : vector<8x1xf32> to vector<8x1x1xf32>
    %21 = tpu.reciprocal %20 {approx = true} : vector<8x1x1xf32> -> vector<8x1x1xf32>
    %22 = vector.broadcast %21 : vector<8x1x1xf32> to vector<8x8x1xf32>
    %23 = arith.mulf %18, %22 : vector<8x8x1xf32>
    %24 = vector.broadcast %23 : vector<8x8x1xf32> to vector<8x8x32xf32>
    %25 = arith.mulf %24, %0 : vector<8x8x32xf32>
    %cst_11 = arith.constant dense<0.000000e+00> : vector<8x32xf32>
    %26 = vector.multi_reduction <add>, %25, %cst_11 [1] : vector<8x8x32xf32> to vector<8x32xf32>
    %c0_12 = arith.constant 0 : index
    %c0_13 = arith.constant 0 : index
    %27 = vector.load %arg5[%c0_12, %c0_13] : memref<8x32xf32, #tpu.memory_space<vmem>>, vector<8x32xf32>
    tpu.vector_store %arg5[%c0_12, %c0_13], %26 {strides = array<i32>} : memref<8x32xf32, #tpu.memory_space<vmem>>, vector<8x32xf32>,
    return
  }
  func.func @transform_0(%arg0: i32) -> (i32, i32, i32) {
    %c0_i32 = arith.constant 0 : i32
    %c0_i32_0 = arith.constant 0 : i32
    %c0_i32_1 = arith.constant 0 : i32
    return %arg0, %c0_i32, %c0_i32_0 : i32, i32, i32
  }
  func.func @transform_1(%arg0: i32) -> (i32, i32) {
    %c0_i32 = arith.constant 0 : i32
    %c0_i32_0 = arith.constant 0 : i32
    %c0_i32_1 = arith.constant 0 : i32
    return %c0_i32, %c0_i32_0 : i32, i32
  }
  func.func @transform_2(%arg0: i32) -> (i32, i32) {
    %c0_i32 = arith.constant 0 : i32
    %c0_i32_0 = arith.constant 0 : i32
    %c0_i32_1 = arith.constant 0 : i32
    return %c0_i32, %c0_i32_0 : i32, i32
  }
  func.func @transform_3(%arg0: i32) -> (i32, i32) {
    %c0_i32 = arith.constant 0 : i32
    %c0_i32_0 = arith.constant 0 : i32
    %c0_i32_1 = arith.constant 0 : i32
    return %c0_i32, %c0_i32_0 : i32, i32
  }
  func.func @transform_4(%arg0: i32) -> (i32, i32) {
    %c0_i32 = arith.constant 0 : i32
    %c0_i32_0 = arith.constant 0 : i32
    return %arg0, %c0_i32 : i32, i32
  }
}

</mosaic_0001>

<bundles_post_ra>
// kernel: tpu_custom_call.1
= control target key start
LH: loop header
LB: loop body
LE: loop exit
PB: predicated region body
PF: predicated region fallthrough
CT: control target
= control target key end

     0   :  { %9 = vsyncpa [#allocation3], 0  ;;  %s1387_s0 = inlined_call_operand.hbm [shape: f32[16,8,32], index: 0, kind: input, shape index: {}]   ;;  %s1388_s1 = inlined_call_operand.hbm [shape: f32[32,128], index: 1, kind: input, shape index: {}]   ;;  %s1389_s2 = inlined_call_operand.vmem [shape: f32[1,128], index: 2, kind: input, shape index: {}]   ;;  %s1390_s3 = inlined_call_operand.vmem [shape: f32[1,128], index: 3, kind: input, shape index: {}]   ;;  %s1391_s4 = inlined_call_operand.hbm [shape: f32[16,32], index: 4, kind: output, shape index: {}]  }
   0x1   :  { %11 = vsyncpa [#allocation3 + $0x1], 0 }
   0x2   :  { %12 = vsyncpa [#allocation6], 0 }
   0x3   :  { %13 = vsyncpa [#allocation4], 0 }
   0x4   :  { %15 = vsyncpa [#allocation4 + $0x1], 0  ;;  %s1075_s15 = smov 0   ;;  %s1077_s16 = smov 0  }
   0x5   :  { %s1079_s17 = smov 0   ;;  %s1081_s18 = smov 0  }
   0x6 LB: > { %s1096_s19 = sadd.s32 4294967295, %s1043_s18   ;;  %s738_s20 = sadd.s32 4294967294, %s1043_s18   ;;  %s1043_s18 = sphi %s1081_s18, %s1411_s18   ;;  %s1039_s17 = sphi %s1079_s17, %s1410_s17   ;;  %s1035_s16 = sphi %s1077_s16, %s1409_s16   ;;  %s1031_s15 = sphi %s1075_s15, %s1408_s15  }
   0x7   : > { %p41_p0 = scmp.ne.s32.totalorder %s1035_s16, %s1031_s15  ;;  %p1392_p1 = scmp.eq.s32.totalorder %s1096_s19, 0 }
   0x8   : > { %p134_p3 = scmp.eq.s32.totalorder %s738_s20, 1  ;;  %p739_p5 = scmp.ge.s32.totalorder %s1043_s18, 1 }
   0x9   : > { %p1105_p4 = por %p1392_p1, %p41_p0  ;;  %p141_p7 = scmp.lt.s32.totalorder %s1043_s18, 3 }
   0xa   : > { %p1110_p6 = por %p134_p3, %p41_p0  ;;  %s1045_s24 = smov [#allocation5]  }
   0xb   : > { %s1395_s21 = scalar_select %p1105_p4, 1, 0 }
   0xc   : > { %s1396_s22 = scalar_select %p1110_p6, 1, 0 }
   0xd   : > { %p1115_p8 = pnand %p739_p5, %p141_p7  ;;  %s153_s25 = sshll.u32 %s1045_s24, 4  ;;  %s1119_s25 = int_to_ptr.vmem [resolvable:$true] %s153_s25 }
   0xe   : > { %s1131_s27 = sadd.s32 1, %s1043_s18   ;;  %s28_s28 = sadd.s32 1, %s1039_s17 }
   0xf   : > { %s1397_s23 = scalar_select %p1115_p8, 1, 0 }
  0x10   : > { %p816_p9 = pneg %p1115_p8  ;;  %s25_s29 = ssub.s32 %s1043_s18, %s1131_s27 }
  0x11   : > { %s915_s6 = scalar_lea.hbm %s1388_s1, 512 }
  0x12   : > { %p1126_p11 = pnand %p816_p9, %p1392_p1  ;;  %p916_p12 = scmp.ne.s32.totalorder %s1388_s1, %s915_s6 }
  0x13   : > { %p922_p5 = scmp.lt.u32.totalorder %s915_s6, %s1388_s1 }
  0x14   : > { %p917_p13 = pneg %p1126_p11 }
  0x16   : > { %p918_p0 = pnand %p917_p13, %p916_p12 }
  0x18   : > { %p919_p3 = pneg %p918_p0 }
  0x1a   : > { %p924_p7 = pnand %p922_p5, %p919_p3 }
  0x1c   : > { %927 = shalt.err (!%p924_p7)
}
  0x1d   : > { %s928_s11 = scalar_lea.vmem %s1119_s25, 512  ;;  %p936_p2 = scmp.lt.s32.totalorder %s1119_s25, %s1119_s25 }
  0x1e   : > { %p929_p9 = scmp.ne.s32.totalorder %s1119_s25, %s928_s11  ;;  %p937_p6 = scmp.lt.s32.totalorder %s928_s11, %s928_s11 }
  0x20   : > { %p931_p10 = pnand %p929_p9, %p917_p13  ;;  %p938_p4 = por %p937_p6, %p936_p2 }
  0x22   : > { %p932_p1 = pneg %p931_p10 }
  0x24   : > { %p939_p8 = pnand %p938_p4, %p932_p1 }
  0x26   : > { %942 = shalt.err (!%p939_p8)
}
  0x27   : > { %s1046_s12 = smov 128   ;;  %s1047_s13 = smov 8  }
  0x28   : > { %819 = dma.hbm_to_vmem [thread:$0]  (!%p1126_p11), %s1388_s1, 512, %s1119_s25, [#allocation6], %s1046_s12, %s1046_s12, %s1047_s13  }
  0x29   : > { %p26_p1 = scmp.eq.s32.totalorder %s25_s29, 0  ;;  %p35_p2 = scmp.ne.s32.totalorder %s1039_s17, %s1035_s16 }
  0x2a   : > { %p36_p4 = scmp.eq.s32.totalorder %s1043_s18, 0  ;;  %p829_p6 = scmp.lt.s32.totalorder %s1043_s18, 2 }
  0x2b   : > { %s1165_s24 = scalar_select %p26_p1, %s1039_s17, %s28_s28  }
  0x2c   : > { %p37_p8 = por %p36_p4, %p35_p2  ;;  %p1399_p10 = scmp.eq.s32.totalorder %s1096_s19, 1 }
  0x2d   : > { %s173_s26 = sand.u32 1, %s1039_s17   ;;  %s763_s5 = sshll.u32 %s1043_s18, 10 }
  0x2e   : > { %p1169_p12 = por %p1399_p10, %p35_p2  ;;  %s742_s6 = sshll.u32 %s173_s26, 6 }
  0x2f   : > { %s1178_s9 = scalar_lea.hbm %s1387_s0, %s763_s5  ;;  %s177_s25 = scalar_lea.vmem [#allocation2], %s742_s6 }
  0x30   : > { %s184_s28 = sshll.u32 %s177_s25, 4  ;;  %p1180_p11 = pnand %p829_p6, %p37_p8  ;;  %s1184_s28 = int_to_ptr.vmem [resolvable:$true] %s184_s28 }
  0x31   : > { %s1186_s10 = scalar_lea.sflag [#allocation3], %s173_s26  ;;  %s943_s11 = scalar_lea.hbm %s1178_s9, 1024 }
  0x32   : > { %p944_p13 = scmp.ne.s32.totalorder %s1178_s9, %s943_s11  ;;  %p945_p0 = pneg %p1180_p11 }
  0x33   : > { %s948_s5 = scalar_lea.hbm %s1387_s0, 2048  ;;  %p949_p7 = scmp.lt.u32.totalorder %s1178_s9, %s1387_s0 }
  0x34   : > { %p946_p3 = pnand %p945_p0, %p944_p13  ;;  %p950_p9 = scmp.lt.u32.totalorder %s948_s5, %s943_s11 }
  0x35   : > { %p952_p2 = scmp.lt.u32.totalorder %s943_s11, %s1178_s9 }
  0x36   : > { %p947_p5 = pneg %p946_p3  ;;  %p951_p1 = por %p950_p9, %p949_p7 }
  0x38   : > { %p953_p4 = por %p952_p2, %p951_p1 }
  0x3a   : > { %p954_p6 = pnand %p953_p4, %p947_p5 }
  0x3c   : > { %957 = shalt.err (!%p954_p6)
}
  0x3d   : > { %s958_s26 = scalar_lea.vmem %s1184_s28, 1024  ;;  %s1048_s8 = smov [#allocation2]  }
  0x3e   : > { %p959_p8 = scmp.ne.s32.totalorder %s1184_s28, %s958_s26  ;;  %s963_s25 = sshll.u32 %s1048_s8, 4  ;;  %s964_s25 = int_to_ptr.vmem [resolvable:$false] %s963_s25 }
  0x3f   : > { %s965_s14 = scalar_lea.vmem %s964_s25, 2048  ;;  %p966_p3 = scmp.lt.s32.totalorder %s1184_s28, %s964_s25 }
  0x40   : > { %p961_p10 = pnand %p959_p8, %p945_p0  ;;  %p967_p7 = scmp.lt.s32.totalorder %s965_s14, %s958_s26 }
  0x42   : > { %p962_p13 = pneg %p961_p10  ;;  %p968_p9 = por %p967_p7, %p966_p3 }
  0x44   : > { %p969_p1 = pnand %p968_p9, %p962_p13 }
  0x46   : > { %972 = shalt.err (!%p969_p1)
}
  0x47   : > { %823 = dma.hbm_to_vmem [thread:$0]  (!%p1180_p11), %s1178_s9, 1024, %s1184_s28, %s1186_s10, %s1046_s12, %s1046_s12, %s1047_s13  }
  0x48   : > { %p1402_p0 = scmp.ne.s32.totalorder %s1397_s23, 0 }
  0x49   : > { %s1220_s11 = sand.u32 (!%p1402_p0), 1, %s1035_s16   ;;  %p1403_p5 = scmp.ne.s32.totalorder (!%p1402_p0), %s1395_s21, 0 }
  0x4a   : > { %196 = sbr.rel (%p1402_p0) target bundleno = 565 (0x235), region = 36  ;;  %s746_s20 = sshll.u32 (!%p1402_p0), %s1220_s11, 6 }
  0x4b   : > { %s199_s5 = scalar_lea.sflag (!%p1402_p0), [#allocation3], %s1220_s11  ;;  %s1224_s6 = scalar_lea.vmem (!%p1402_p0), [#allocation2], %s746_s20 }
  0x51   : > { %1018 = dma.done.wait (%p1403_p5), %s199_s5, 1024  }
  0x52   : > { %1020 = vsyncadd (%p1403_p5), %s199_s5, 4294966272  ;;  %p1404_p11 = scmp.eq.s32.totalorder %s1096_s19, 0 }
  0x54   : > { %1022 = dma.done.wait (%p1404_p11), [#allocation6], 512   ;;  %p1405_p2 = pmov %p1404_p11 }
  0x55   : > { %vm251_vm0 = vcmask 261120   ;;  %v240_v0 = vld [vmem:[#allocation5] sm:$0xff]  ;;  %v241_v1 = vld [vmem:[#allocation5 + $0x8] sm:$0xff]  ;;  %v242_v2 = vld [vmem:[#allocation5 + $0x10] sm:$0xff]  ;;  %vm628_vm1 = vcmask 1041409   ;;  %vm630_vm2 = vcmask 1042434  }
  0x56   : > { %1024 = vsyncadd (%p1405_p2), [#allocation6], 4294966784  ;;  %v796_v3 = vpack.c.bf16 %v241_v1, %v240_v0  ;;  %v243_v4 = vld [vmem:[#allocation5 + $0x18] sm:$0xff]  ;;  %v1235_v5 = vld [vmem:[%s1224_s6] sm:$0xff]  ;;  %vm632_vm3 = vcmask 1043459   ;;  %s748_s9 = sshll.u32 %s1220_s11, 3 }
  0x57   : > { %v800_v6 = vpack.c.bf16 %v243_v4, %v242_v2  ;;  %784 = vmatprep.mubr.msk.f32.mxu0 %vm251_vm0, %v1235_v5  ;;  %v1240_v7 = vld [vmem:[%s1224_s6 + $0x20] sm:$0xff]  ;;  %v1245_v8 = vld [vmem:[%s1224_s6 + $0x8] sm:$0xff]  ;;  %v1251_v10 = vld [vmem:[%s1224_s6 + $0x10] sm:$0xff]  ;;  %vm634_vm4 = vcmask 1044484   ;;  %vm636_vm5 = vcmask 1045509   ;;  %vm638_vm6 = vcmask 1046534  }
  0x58   : > { %797 = vmatprep.subr.bf16.mxu0 %v796_v3  ;;  %804 = vmatprep.subr.bf16.mxu1 %v796_v3  ;;  %v1248_v9 = vld [vmem:[%s1224_s6 + $0x28] sm:$0xff]  ;;  %v1254_v11 = vld [vmem:[%s1224_s6 + $0x30] sm:$0xff]  ;;  %v1263_v12 = vld [vmem:[%s1224_s6 + $0x18] sm:$0xff]  ;;  %s760_s28 = sshll.u32 %s1096_s19, 7  ;;  %s230_s29 = scalar_lea.vmem [#allocation7], %s748_s9  ;;  %vm640_vm7 = vcmask 1047559  }
  0x59   : > { %799 = vmatpush3.bf16.msra.mxu0 %v796_v3  ;;  %806 = vmatpush3.bf16.msra.mxu1 %v796_v3  ;;  %v1268_v13 = vld [vmem:[%s1224_s6 + $0x38] sm:$0xff]  ;;  %v749_v14 = vld [vmem:[%s1389_s2] ss:$0 sm:$0xff]  ;;  %s658_s10 = sshll.u32 %s230_s29, 4  ;;  %s1342_s8 = scalar_lea.hbm %s1391_s4, %s760_s28  ;;  %s1344_s10 = int_to_ptr.vmem [resolvable:$true] %s658_s10 }
  0x5a   : > { %801 = vmatprep.subr.bf16.mxu0 %v800_v6  ;;  %805 = vmatprep.subr.bf16.mxu1 %v800_v6  ;;  %v758_v30 = vld [vmem:[%s1390_s3] ss:$0 sm:$0xff]  ;;  %s645_s25 = scalar_lea.sflag [#allocation4], %s1220_s11  ;;  %s973_s19 = scalar_lea.vmem %s1344_s10, 128 }
  0x5b   : > { %790 = vmatprep.mubr.msk.f32.mxu1 %vm251_vm0, %v1240_v7  ;;  %p974_p4 = scmp.ne.s32.totalorder %s1344_s10, %s973_s19  ;;  %s1049_s14 = smov [#allocation7]  }
  0x5c   : > { %s977_s20 = sshll.u32 %s1049_s14, 4  ;;  %s978_s20 = int_to_ptr.vmem [resolvable:$false] %s977_s20 }
  0x5d   : > { %803 = vmatpush3.bf16.msra.mxu0 %v800_v6  ;;  %807 = vmatpush3.bf16.msra.mxu1 %v800_v6  ;;  %p975_p6 = pnand %p974_p4, %p1169_p12  ;;  %s979_s5 = scalar_lea.vmem %s978_s20, 256 }
  0x5e   : > { %p980_p10 = scmp.lt.s32.totalorder %s1344_s10, %s978_s20  ;;  %p981_p13 = scmp.lt.s32.totalorder %s979_s5, %s973_s19 }
  0x5f   : > { %p976_p8 = pneg %p975_p6 }
  0x60   : > { %785 = vmatmul.mubr.msk.f32.vlgmr.msra.gmra.mrb[0].mxu0 %vm251_vm0, %v1245_v8  ;;  %791 = vmatmul.mubr.msk.f32.vlgmr.msra.gmra.mrb[0].mxu1 %vm251_vm0, %v1248_v9  ;;  %p982_p3 = por %p981_p13, %p980_p10 }
  0x61   : > { %787 = vmatprep.mubr.msk.f32.mxu0 %vm251_vm0, %v1251_v10  ;;  %793 = vmatprep.mubr.msk.f32.mxu1 %vm251_vm0, %v1254_v11 }
  0x62   : > { %p983_p7 = pnand %p982_p3, %p976_p8 }
  0x64   : > { %788 = vmatmul.mubr.msk.f32.gmra.mrb[2].mxu0 %vm251_vm0, %v1263_v12  ;;  %794 = vmatmul.mubr.msk.f32.gmra.mrb[2].mxu1 %vm251_vm0, %v1268_v13 }
 0x133   : > { %v786_v15 = vpop.f32.mrb[0].mxu0  ;;  %v792_v16 = vpop.f32.mrb[0].mxu1 }
 0x134   : > { %v348_v17 = vadd.f32 %v786_v15, %v749_v14  ;;  %v342_v18 = vpop.f32.mrb[1].mxu0  ;;  %v362_v19 = vpop.f32.mrb[1].mxu1  ;;  %v368_v29 = vadd.f32 %v792_v16, %v749_v14 }
 0x135   : > { %v343_v20 = vadd.f32 %v749_v14, %v342_v18  ;;  %v363_v21 = vadd.f32 %v749_v14, %v362_v19 }
 0x136   : > { %867 = vtanh.f32 %v348_v17 }
 0x137   : > { %v789_v22 = vpop.f32.mrb[2].mxu0  ;;  %v795_v23 = vpop.f32.mrb[2].mxu1  ;;  %869 = vtanh.f32 %v343_v20 }
 0x138   : > { %v358_v24 = vadd.f32 %v789_v22, %v749_v14  ;;  %v352_v25 = vpop.f32.mrb[3].mxu0  ;;  %v372_v26 = vpop.f32.mrb[3].mxu1  ;;  %871 = vtanh.f32 %v363_v21  ;;  %v378_v32 = vadd.f32 %v795_v23, %v749_v14 }
 0x139   : > { %v353_v27 = vadd.f32 %v749_v14, %v352_v25  ;;  %v373_v28 = vadd.f32 %v749_v14, %v372_v26 }
 0x13a   : > { %873 = vtanh.f32 %v358_v24 }
 0x13b   : > { %875 = vtanh.f32 %v353_v27 }
 0x13c   : > { %877 = vtanh.f32 %v373_v28 }
 0x13d   : > { %879 = vtanh.f32 %v368_v29 }
 0x13e   : > { %881 = vtanh.f32 %v378_v32 }
 0x140   : > { %v868_v31 = vpop.eup %867 }
 0x141   : > { %v397_v33 = vmul.f32 %v868_v31, %v758_v30  ;;  %v870_v34 = vpop.eup %869 }
 0x142   : > { %v872_v35 = vpop.eup %871  ;;  %v396_v38 = vmul.f32 %v870_v34, %v758_v30 }
 0x143   : > { %406 = vadd.xlane.f32.xlu0 %v397_v33  ;;  %v400_v40 = vmul.f32 %v872_v35, %v758_v30 }
 0x144   : > { %v874_v36 = vpop.eup %873 }
 0x145   : > { %v399_v37 = vmul.f32 %v874_v36, %v758_v30  ;;  %v876_v39 = vpop.eup %875 }
 0x146   : > { %v878_v41 = vpop.eup %877  ;;  %v398_v42 = vmul.f32 %v876_v39, %v758_v30 }
 0x147   : > { %410 = vadd.xlane.f32.xlu1 %v399_v37  ;;  %404 = vadd.xlane.f32.xlu0 %v396_v38  ;;  %v880_v43 = vpop.eup %879  ;;  %v402_v44 = vmul.f32 %v878_v41, %v758_v30 }
 0x148   : > { %v401_v45 = vmul.f32 %v880_v43, %v758_v30  ;;  %v882_v46 = vpop.eup %881 }
 0x149   : > { %v403_v47 = vmul.f32 %v882_v46, %v758_v30 }
 0x14b   : > { %408 = vadd.xlane.f32.xlu1 %v398_v42  ;;  %412 = vadd.xlane.f32.xlu0 %v400_v40 }
 0x14f   : > { %414 = vadd.xlane.f32.xlu1 %v401_v45  ;;  %416 = vadd.xlane.f32.xlu0 %v402_v44 }
 0x153   : > { %418 = vadd.xlane.f32.xlu1 %v403_v47 }
 0x1d0   : > { %v407_v48 = vpop.xlane.xlu0 %406 }
 0x1d1   : > { %v426_v49 = vrot.slane %v407_v48, 4 }
 0x1d3   : > { %v427_v50 = vmax.f32 %v407_v48, %v426_v49 }
 0x1d4   : > { %v411_v51 = vpop.xlane.xlu1 %410  ;;  %v405_v52 = vpop.xlane.xlu0 %404 }
 0x1d5   : > { %v428_v53 = vrot.slane %v427_v50, 2  ;;  %v438_v54 = vrot.slane %v411_v51, 4  ;;  %v420_v55 = vrot.slane %v405_v52, 4 }
 0x1d7   : > { %v429_v56 = vmax.f32 %v427_v50, %v428_v53  ;;  %v439_v57 = vmax.f32 %v411_v51, %v438_v54  ;;  %v421_v58 = vmax.f32 %v405_v52, %v420_v55 }
 0x1d8   : > { %v409_v59 = vpop.xlane.xlu1 %408  ;;  %v413_v60 = vpop.xlane.xlu0 %412 }
 0x1d9   : > { %v430_v61 = vrot.slane %v429_v56, 1  ;;  %v440_v62 = vrot.slane %v439_v57, 2  ;;  %v422_v63 = vrot.slane %v421_v58, 2  ;;  %v432_v0 = vrot.slane %v409_v59, 4 }
 0x1da   : > { %v444_v1 = vrot.slane %v413_v60, 4 }
 0x1db   : > { %v431_v2 = vmax.f32 %v429_v56, %v430_v61  ;;  %v441_v3 = vmax.f32 %v439_v57, %v440_v62  ;;  %v423_v4 = vmax.f32 %v421_v58, %v422_v63  ;;  %v433_v6 = vmax.f32 %v409_v59, %v432_v0 }
 0x1dc   : > { %v445_v14 = vmax.f32 %v413_v60, %v444_v1  ;;  %v415_v15 = vpop.xlane.xlu1 %414  ;;  %v417_v16 = vpop.xlane.xlu0 %416 }
 0x1dd   : > { %v469_v17 = vsub.f32 %v407_v48, %v431_v2  ;;  %v442_v18 = vrot.slane %v441_v3, 1  ;;  %v424_v19 = vrot.slane %v423_v4, 1  ;;  %v434_v20 = vrot.slane %v433_v6, 2 }
 0x1de   : > { %v446_v21 = vrot.slane %v445_v14, 2  ;;  %v450_v22 = vrot.slane %v415_v15, 4  ;;  %v456_v23 = vrot.slane %v417_v16, 4 }
 0x1df   : > { %v478_v24 = vmul.f32 1.442695, %v469_v17  ;;  %v443_v25 = vmax.f32 %v441_v3, %v442_v18  ;;  %v425_v26 = vmax.f32 %v423_v4, %v424_v19  ;;  %v435_v27 = vmax.f32 %v433_v6, %v434_v20 }
 0x1e0   : > { %v447_v28 = vmax.f32 %v445_v14, %v446_v21  ;;  %v451_v29 = vmax.f32 %v415_v15, %v450_v22  ;;  %v457_v30 = vmax.f32 %v417_v16, %v456_v23  ;;  %v419_v31 = vpop.xlane.xlu1 %418 }
 0x1e1   : > { %883 = vpow2.f32 %v478_v24  ;;  %v471_v32 = vsub.f32 %v411_v51, %v443_v25  ;;  %v468_v33 = vsub.f32 %v405_v52, %v425_v26  ;;  %v436_v34 = vrot.slane %v435_v27, 1 }
 0x1e2   : > { %v448_v35 = vrot.slane %v447_v28, 1  ;;  %v452_v36 = vrot.slane %v451_v29, 2  ;;  %v458_v37 = vrot.slane %v457_v30, 2  ;;  %v462_v38 = vrot.slane %v419_v31, 4 }
 0x1e3   : > { %v482_v39 = vmul.f32 1.442695, %v471_v32  ;;  %v476_v40 = vmul.f32 1.442695, %v468_v33  ;;  %v437_v41 = vmax.f32 %v435_v27, %v436_v34 }
 0x1e4   : > { %v449_v42 = vmax.f32 %v447_v28, %v448_v35  ;;  %v453_v43 = vmax.f32 %v451_v29, %v452_v36  ;;  %v459_v44 = vmax.f32 %v457_v30, %v458_v37  ;;  %v463_v45 = vmax.f32 %v419_v31, %v462_v38 }
 0x1e5   : > { %885 = vpow2.f32 %v482_v39  ;;  %v470_v46 = vsub.f32 %v409_v59, %v437_v41 }
 0x1e6   : > { %887 = vpow2.f32 %v476_v40  ;;  %v472_v47 = vsub.f32 %v413_v60, %v449_v42  ;;  %v454_v48 = vrot.slane %v453_v43, 1  ;;  %v460_v49 = vrot.slane %v459_v44, 1 }
 0x1e7   : > { %v480_v50 = vmul.f32 1.442695, %v470_v46  ;;  %v464_v51 = vrot.slane %v463_v45, 2 }
 0x1e8   : > { %v484_v52 = vmul.f32 1.442695, %v472_v47  ;;  %v455_v53 = vmax.f32 %v453_v43, %v454_v48  ;;  %v461_v54 = vmax.f32 %v459_v44, %v460_v49 }
 0x1e9   : > { %889 = vpow2.f32 %v480_v50  ;;  %v465_v55 = vmax.f32 %v463_v45, %v464_v51 }
 0x1ea   : > { %891 = vpow2.f32 %v484_v52  ;;  %v473_v56 = vsub.f32 %v415_v15, %v455_v53  ;;  %v474_v57 = vsub.f32 %v417_v16, %v461_v54 }
 0x1eb   : > { %v1280_v58 = vpop.eup %883  ;;  %v466_v61 = vrot.slane %v465_v55, 1 }
 0x1ec   : > { %v498_v62 = vrot.slane %v1280_v58, 4  ;;  %v486_v59 = vmul.f32 1.442695, %v473_v56  ;;  %v488_v63 = vmul.f32 1.442695, %v474_v57 }
 0x1ed   : > { %v467_v60 = vmax.f32 %v465_v55, %v466_v61 }
 0x1ee   : > { %v499_v0 = vadd.f32 %v1280_v58, %v498_v62  ;;  %893 = vpow2.f32 %v486_v59 }
 0x1ef   : > { %v1284_v1 = vpop.eup %885  ;;  %895 = vpow2.f32 %v488_v63  ;;  %v475_v2 = vsub.f32 %v419_v31, %v467_v60 }
 0x1f0   : > { %v1286_v3 = vpop.eup %887  ;;  %v500_v4 = vrot.slane %v499_v0, 2  ;;  %v510_v6 = vrot.slane %v1284_v1, 4 }
 0x1f1   : > { %v492_v14 = vrot.slane %v1286_v3, 4  ;;  %v490_v15 = vmul.f32 1.442695, %v475_v2 }
 0x1f2   : > { %v501_v16 = vadd.f32 %v500_v4, %v499_v0  ;;  %v511_v17 = vadd.f32 %v1284_v1, %v510_v6 }
 0x1f3   : > { %v1291_v18 = vpop.eup %889  ;;  %v493_v19 = vadd.f32 %v1286_v3, %v492_v14  ;;  %897 = vpow2.f32 %v490_v15 }
 0x1f4   : > { %v1294_v20 = vpop.eup %891  ;;  %v502_v21 = vrot.slane %v501_v16, 1  ;;  %v512_v22 = vrot.slane %v511_v17, 2  ;;  %v504_v23 = vrot.slane %v1291_v18, 4 }
 0x1f5   : > { %v494_v24 = vrot.slane %v493_v19, 2  ;;  %v516_v25 = vrot.slane %v1294_v20, 4 }
 0x1f6   : > { %v503_v26 = vadd.f32 %v502_v21, %v501_v16  ;;  %v513_v27 = vadd.f32 %v512_v22, %v511_v17  ;;  %v505_v28 = vadd.f32 %v1291_v18, %v504_v23 }
 0x1f7   : > { %v495_v29 = vadd.f32 %v494_v24, %v493_v19  ;;  %v517_v30 = vadd.f32 %v1294_v20, %v516_v25 }
 0x1f8   : > { %v1300_v31 = vpop.eup %893  ;;  %899 = vrcp.f32 %v503_v26  ;;  %v514_v32 = vrot.slane %v513_v27, 1  ;;  %v506_v33 = vrot.slane %v505_v28, 2 }
 0x1f9   : > { %v1302_v34 = vpop.eup %895  ;;  %v496_v35 = vrot.slane %v495_v29, 1  ;;  %v518_v36 = vrot.slane %v517_v30, 2  ;;  %v522_v37 = vrot.slane %v1300_v31, 4 }
 0x1fa   : > { %v515_v38 = vadd.f32 %v514_v32, %v513_v27  ;;  %v507_v39 = vadd.f32 %v506_v33, %v505_v28  ;;  %v528_v40 = vrot.slane %v1302_v34, 4 }
 0x1fb   : > { %v497_v41 = vadd.f32 %v496_v35, %v495_v29  ;;  %v519_v42 = vadd.f32 %v518_v36, %v517_v30  ;;  %v523_v43 = vadd.f32 %v1300_v31, %v522_v37 }
 0x1fc   : > { %901 = vrcp.f32 %v515_v38  ;;  %v508_v44 = vrot.slane %v507_v39, 1  ;;  %v529_v45 = vadd.f32 %v1302_v34, %v528_v40 }
 0x1fd   : > { %v1308_v46 = vpop.eup %897  ;;  %903 = vrcp.f32 %v497_v41  ;;  %v520_v47 = vrot.slane %v519_v42, 1  ;;  %v524_v48 = vrot.slane %v523_v43, 2 }
 0x1fe   : > { %v509_v49 = vadd.f32 %v508_v44, %v507_v39  ;;  %v530_v50 = vrot.slane %v529_v45, 2  ;;  %v534_v51 = vrot.slane %v1308_v46, 4 }
 0x1ff   : > { %v521_v52 = vadd.f32 %v520_v47, %v519_v42  ;;  %v525_v53 = vadd.f32 %v524_v48, %v523_v43 }
 0x200   : > { %905 = vrcp.f32 %v509_v49  ;;  %v531_v54 = vadd.f32 %v530_v50, %v529_v45  ;;  %v535_v55 = vadd.f32 %v1308_v46, %v534_v51 }
 0x201   : > { %907 = vrcp.f32 %v521_v52  ;;  %v526_v56 = vrot.slane %v525_v53, 1 }
 0x202   : > { %v900_v57 = vpop.eup %899  ;;  %v532_v61 = vrot.slane %v531_v54, 1  ;;  %v536_v62 = vrot.slane %v535_v55, 2 }
 0x203   : > { %v549_v59 = vmul.f32 %v900_v57, %v1280_v58  ;;  %v527_v63 = vadd.f32 %v526_v56, %v525_v53 }
 0x204   : > { %v533_v60 = vadd.f32 %v532_v61, %v531_v54  ;;  %v537_v0 = vadd.f32 %v536_v62, %v535_v55 }
 0x205   : > { %v557_v2 = vmul.f32 %v549_v59, %v1245_v8  ;;  %909 = vrcp.f32 %v527_v63 }
 0x206   : > { %v902_v4 = vpop.eup %901  ;;  %911 = vrcp.f32 %v533_v60  ;;  %v538_v6 = vrot.slane %v537_v0, 1 }
 0x207   : > { %v904_v14 = vpop.eup %903  ;;  %v551_v15 = vmul.f32 %v902_v4, %v1284_v1  ;;  %v571_v16 = vsel %vm251_vm0, %v557_v2, 0.0 }
 0x208   : > { %v548_v17 = vmul.f32 %v904_v14, %v1286_v3  ;;  %v539_v19 = vadd.f32 %v538_v6, %v537_v0  ;;  %v572_v21 = vrot.slane %v571_v16, 4 }
 0x209   : > { %v559_v58 = vmul.f32 %v551_v15, %v1263_v12 }
 0x20a   : > { %v906_v22 = vpop.eup %905  ;;  %v556_v23 = vmul.f32 %v548_v17, %v1235_v5  ;;  %913 = vrcp.f32 %v539_v19  ;;  %v573_v8 = vadd.f32 %v572_v21, %v571_v16 }
 0x20b   : > { %v908_v24 = vpop.eup %907  ;;  %v550_v25 = vmul.f32 %v906_v22, %v1291_v18  ;;  %v585_v26 = vsel %vm251_vm0, %v559_v58, 0.0 }
 0x20c   : > { %v552_v1 = vmul.f32 %v908_v24, %v1294_v20  ;;  %v564_v27 = vsel %vm251_vm0, %v556_v23, 0.0  ;;  %v574_v28 = vrot.slane %v573_v8, 2  ;;  %v586_v3 = vrot.slane %v585_v26, 4 }
 0x20d   : > { %v558_v29 = vmul.f32 %v550_v25, %v1251_v10  ;;  %v565_v30 = vrot.slane %v564_v27, 4 }
 0x20e   : > { %v560_v12 = vmul.f32 %v552_v1, %v1240_v7  ;;  %v587_v32 = vadd.f32 %v586_v3, %v585_v26  ;;  %v575_v37 = vadd.f32 %v574_v28, %v573_v8 }
 0x20f   : > { %v910_v5 = vpop.eup %909  ;;  %v566_v33 = vadd.f32 %v565_v30, %v564_v27  ;;  %v578_v35 = vsel %vm251_vm0, %v558_v29, 0.0 }
 0x210   : > { %v912_v36 = vpop.eup %911  ;;  %v553_v18 = vmul.f32 %v910_v5, %v1300_v31  ;;  %v579_v38 = vrot.slane %v578_v35, 4  ;;  %v588_v20 = vrot.slane %v587_v32, 2  ;;  %v592_v41 = vsel %vm251_vm0, %v560_v12, 0.0 }
 0x211   : > { %v554_v39 = vmul.f32 %v912_v36, %v1302_v34  ;;  %v567_v40 = vrot.slane %v566_v33, 2  ;;  %v593_v45 = vrot.slane %v592_v41, 4  ;;  %v576_v48 = vrot.slane %v575_v37, 1 }
 0x212   : > { %v561_v10 = vmul.f32 %v553_v18, %v1248_v9  ;;  %v580_v42 = vadd.f32 %v579_v38, %v578_v35  ;;  %v589_v7 = vadd.f32 %v588_v20, %v587_v32 }
 0x213   : > { %v562_v43 = vmul.f32 %v554_v39, %v1254_v11  ;;  %v568_v44 = vadd.f32 %v567_v40, %v566_v33  ;;  %v594_v34 = vadd.f32 %v593_v45, %v592_v41  ;;  %v577_v59 = vadd.f32 %v576_v48, %v575_v37 }
 0x214   : > { %v914_v47 = vpop.eup %913  ;;  %v581_v49 = vrot.slane %v580_v42, 2  ;;  %v599_v31 = vsel %vm251_vm0, %v561_v10, 0.0  ;;  %v590_v54 = vrot.slane %v589_v7, 1 }
 0x215   : > { %v555_v50 = vmul.f32 %v914_v47, %v1308_v46  ;;  %v569_v51 = vrot.slane %v568_v44, 1  ;;  %v600_v52 = vrot.slane %v599_v31, 4  ;;  %v606_v9 = vsel %vm251_vm0, %v562_v43, 0.0 }
 0x216   : > { %v582_v53 = vadd.f32 %v581_v49, %v580_v42  ;;  %v595_v11 = vrot.slane %v594_v34, 2  ;;  %v607_v62 = vrot.slane %v606_v9, 4  ;;  %v591_v6 = vadd.f32 %v590_v54, %v589_v7 }
 0x217   : > { %v563_v55 = vmul.f32 %v555_v50, %v1268_v13  ;;  %v570_v56 = vadd.f32 %v569_v51, %v568_v44  ;;  %v601_v57 = vadd.f32 %v600_v52, %v599_v31 }
 0x218   : > { %v583_v61 = vrot.slane %v582_v53, 1  ;;  %v596_v63 = vadd.f32 %v595_v11, %v594_v34  ;;  %v608_v2 = vadd.f32 %v607_v62, %v606_v9 }
 0x219   : > { %v602_v46 = vrot.slane %v601_v57, 2  ;;  %v613_v60 = vsel %vm251_vm0, %v563_v55, 0.0  ;;  %v629_v15 = vsel %vm628_vm1, %v577_v59, %v570_v56 }
 0x21a   : > { %v584_v0 = vadd.f32 %v583_v61, %v582_v53  ;;  %v614_v4 = vrot.slane %v613_v60, 4  ;;  %v597_v14 = vrot.slane %v596_v63, 1  ;;  %v609_v16 = vrot.slane %v608_v2, 2 }
 0x21b   : > { %v603_v13 = vadd.f32 %v602_v46, %v601_v57 }
 0x21c   : > { %v615_v17 = vadd.f32 %v614_v4, %v613_v60  ;;  %v631_v19 = vsel %vm630_vm2, %v584_v0, %v629_v15  ;;  %v598_v21 = vadd.f32 %v597_v14, %v596_v63  ;;  %v610_v23 = vadd.f32 %v609_v16, %v608_v2 }
 0x21d   : > { %v604_v58 = vrot.slane %v603_v13, 1  ;;  %v633_v22 = vsel %vm632_vm3, %v591_v6, %v631_v19 }
 0x21e   : > { %v616_v8 = vrot.slane %v615_v17, 2  ;;  %v635_v25 = vsel %vm634_vm4, %v598_v21, %v633_v22  ;;  %v611_v26 = vrot.slane %v610_v23, 1 }
 0x21f   : > { %v605_v24 = vadd.f32 %v604_v58, %v603_v13 }
 0x220   : > { %v617_v1 = vadd.f32 %v616_v8, %v615_v17  ;;  %v612_v27 = vadd.f32 %v611_v26, %v610_v23 }
 0x221   : > { %v637_v3 = vsel %vm636_vm5, %v605_v24, %v635_v25 }
 0x222   : > { %v618_v28 = vrot.slane %v617_v1, 1  ;;  %v639_v30 = vsel %vm638_vm6, %v612_v27, %v637_v3 }
 0x224   : > { %v619_v29 = vadd.f32 %v618_v28, %v617_v1 }
 0x226   : > { %v641_v12 = vsel %vm640_vm7, %v619_v29, %v639_v30 }
 0x227   : > { %643 = vst.msk [vmem:[%s230_s29] sm:$0xff] %vm251_vm0, %v641_v12 }
 0x228   : > { %986 = shalt.err (!%p983_p7)
}
 0x229   : > { %s987_s11 = scalar_lea.hbm %s1342_s8, 128  ;;  %s991_s23 = scalar_lea.hbm %s1391_s4, 256 }
 0x22a   : > { %p988_p9 = scmp.ne.s32.totalorder %s1342_s8, %s987_s11  ;;  %p992_p5 = scmp.lt.u32.totalorder %s1342_s8, %s1391_s4 }
 0x22b   : > { %p993_p11 = scmp.lt.u32.totalorder %s991_s23, %s987_s11  ;;  %p995_p4 = scmp.lt.u32.totalorder %s987_s11, %s1342_s8 }
 0x22c   : > { %p989_p1 = pnand %p988_p9, %p1169_p12 }
 0x22d   : > { %p994_p2 = por %p993_p11, %p992_p5 }
 0x22e   : > { %p990_p0 = pneg %p989_p1 }
 0x22f   : > { %p996_p6 = por %p995_p4, %p994_p2 }
 0x231   : > { %p997_p8 = pnand %p996_p6, %p990_p0 }
 0x233   : > { %1000 = shalt.err (!%p997_p8)
}
 0x234   : > { %814 = dma.vmem_to_hbm [thread:$0]  (%p1169_p12), %s1344_s10, 128, %s1342_s8, %s645_s25  }
 0x235 PF: > { %s670_s9 = sand.u32 1, %s1031_s15   ;;  %p1406_p10 = scmp.ne.s32.totalorder %s1396_s22, 0 }
 0x236   : > { %p1407_p13 = scmp.ge.s32.totalorder %s1043_s18, 2  ;;  %s671_s28 = scalar_lea.sflag [#allocation4], %s670_s9 }
 0x238   : > { %p825_p3 = pnand %p1407_p13, %p1406_p10 }
 0x23a   : > { %1026 = dma.done.wait (!%p825_p3), %s671_s28, 128  }
 0x23b   : > { %1028 = vsyncadd (!%p825_p3), %s671_s28, 4294967168  ;;  %p18_p7 = scmp.ge.s32.totalorder %s1131_s27, 4   ;;  %s1408_s15 = smov %s1035_s16 }
 0x23c   : > { %s1409_s16 = smov %s1039_s17  ;;  %s1410_s17 = smov %s1165_s24 }
 0x23d   : > { %s1411_s18 = smov %s1131_s27  ;;  %20 = sbr.rel (!%p18_p7) target bundleno = 6 (0x6), region = 85 }
 0x244   :  { %676 = vsyncpa [#allocation3], 1 }
 0x245   :  { %678 = vsyncpa [#allocation3 + $0x1], 1 }
 0x246   :  { %679 = vsyncpa [#allocation6], 1 }
 0x247   :  { %680 = vsyncpa [#allocation4], 1 }
 0x248   :  { %682 = vsyncpa [#allocation4 + $0x1], 1 }

</bundles_post_ra>
